<compile_context>
chip_gen: v7x
topology: tpu7x:2x2x1
jax: 0.10.0
libtpu: 0.0.40
codegen_flags: <defaults>
</compile_context>

<pallas_src>
import jax
import jax.numpy as jnp
from jax.experimental import pallas as pl
from jax.experimental.pallas import tpu as pltpu


# ----------------------------------------------------------------------------
# Pallas kernel: 3-layer MLP computed feature-major (batch on lanes).
#   inp_ref  : (TM, 3)          f32   batch-major input tile (as the caller holds it)
#   ids_ref  : (1,  TM)         int32 team ids, lane-major
#   w1a_ref  : (H1, 3)          f32   raw-feature slice of W1
#   m_ref    : (H1, num_teams)  f32   W1[:, 3:] @ table.T  (embedding folded in)
#   b1_ref   : (H1, 1) f32, w2_ref: (H2, H1), b2_ref: (H2, 1), w3_ref: (3, H2), b3_ref: (3, 1)
#   outT_ref : (3, TM)                feature-major output tile (lane-dense stores)
# ----------------------------------------------------------------------------
def _first_half_nn_kernel(inp_ref, ids_ref,
                          w1a_ref, m_ref, b1_ref,
                          w2_ref, b2_ref,
                          w3_ref, b3_ref,
                          outT_ref):
    # Layer 1, raw features: contract W1a (H1, 3) with the batch-major input
    # tile (TM, 3) along the feature axis (transposed-RHS matmul) -> (H1, TM).
    # This keeps batch on the lane axis without any wrapper-side transpose.
    h1 = jax.lax.dot_general(
        w1a_ref[...], inp_ref[...],
        dimension_numbers=(((1,), (1,)), ((), ())),
        preferred_element_type=jnp.float32)

    # Layer 1, team contribution: one-hot(ids) on the MXU against the folded
    # embedding matrix M = W1b @ table.T.  K = num_teams, negligible MXU cost.
    ids = ids_ref[...]                                           # (1, TM) int32
    num_teams = m_ref.shape[1]
    one_hot = (jax.lax.broadcasted_iota(jnp.int32, (num_teams, ids.shape[1]), 0)
               == ids).astype(jnp.float32)                       # (num_teams, TM)
    h1 = h1 + jnp.dot(m_ref[...], one_hot, preferred_element_type=jnp.float32)
    h1 = jnp.maximum(h1 + b1_ref[...], 0.0)    # ReLU (dropout = identity, eval)

    # Layer 2
    h2 = jnp.dot(w2_ref[...], h1, preferred_element_type=jnp.float32) + b2_ref[...]
    h2 = jnp.maximum(h2, 0.0)                  # ReLU (dropout = identity, eval)

    # Output layer: (3, TM), batch on lanes -> fully dense stores.
    out = jnp.dot(w3_ref[...], h2, preferred_element_type=jnp.float32) + b3_ref[...]
    outT_ref[...] = out.astype(outT_ref.dtype)


# ----------------------------------------------------------------------------
# Wrapper.  Params use PyTorch nn.Linear layout:
#   w1: (H1, 3+T), b1: (H1,), w2: (H2, H1), b2: (H2,), w3: (3, H2), b3: (3,)
# ----------------------------------------------------------------------------
def first_half_nn_forward(inp, teams, team_table, params, *,
                          block_b=4096, out_dtype=jnp.float32,
                          batch_major_output=True):
    """FirstHalfNN.forward(input, teams) with the team embedding fused in.

    inp:        (B, 3)  float32 raw features (batch-major, as the caller holds them).
    teams:      (B,)    integer team ids.
    team_table: (num_teams, T) float32 team characteristics table
                (stand-in for get_teams_caracteristics).
    Returns (B, 3); pass batch_major_output=False to get (3, B) and skip the
    final HBM relayout pass if the consumer can take feature-major logits.
    """
    w1, b1, w2, b2, w3, b3 = params
    B, n_in = inp.shape                            # n_in == 3
    num_teams, n_tw = team_table.shape
    h1d, h2d, n_out = w1.shape[0], w2.shape[0], w3.shape[0]
    assert w1.shape[1] == n_in + n_tw

    # Fold embedding lookup + layer-1 team slice into one tiny matrix:
    #   W1b @ teams_weights^T == (W1b @ table^T) @ one_hot(teams)
    w1a = w1[:, :n_in]                                             # (H1, 3)
    m_teams = jnp.dot(w1[:, n_in:], team_table.T,
                      precision="highest")                         # (H1, num_teams)
    b1c = b1.reshape(h1d, 1)
    b2c = b2.reshape(h2d, 1)
    b3c = b3.reshape(n_out, 1)
    ids = teams.astype(jnp.int32).reshape(1, B)    # metadata-only reshape

    # Batch tile: large (per-grid-step overhead ~0.35us, per-step DMAs are tiny),
    # a multiple of 256 (full-width MXU pushes on v6e/v7x), and >= 2 grid steps
    # for large B so "parallel" can shard the batch across both v7x TensorCores.
    MXU_N = 256
    assert block_b % MXU_N == 0, "block_b must be a multiple of 256"
    if B <= 2 * MXU_N:
        tm = B                                     # single full-array tile (always legal)
    else:
        half = -(-B // 2)                          # ceil(B/2): at least 2 grid steps
        tm = min(block_b, ((half + MXU_N - 1) // MXU_N) * MXU_N)
    grid = (pl.cdiv(B, tm),)

    def resident(arr):                             # full-array block, VMEM-resident
        return pl.BlockSpec(arr.shape, lambda i: (0, 0))

    # TODO(synk): if profiling still shows exposed DMA at this tile size, add
    # pipeline_mode=pl.Buffered(3) to the batch-tiled in/out BlockSpecs.
    outT = pl.pallas_call(
        _first_half_nn_kernel,
        out_shape=jax.ShapeDtypeStruct((n_out, B), out_dtype),
        grid=grid,
        in_specs=[pl.BlockSpec((tm, n_in), lambda i: (i, 0)),     # (B,3) rows, contiguous
                  pl.BlockSpec((1, tm), lambda i: (0, i)),        # team ids, lane-major
                  resident(w1a), resident(m_teams), resident(b1c),
                  resident(w2), resident(b2c),
                  resident(w3), resident(b3c)],
        out_specs=pl.BlockSpec((n_out, tm), lambda i: (0, i)),    # lane-dense output
        compiler_params=pltpu.CompilerParams(
            dimension_semantics=("parallel",)),
    )(inp, ids, w1a, m_teams, b1c, w2, b2c, w3, b3c)

    return outT.T if batch_major_output else outT                 # (B, 3) or (3, B)


# ----------------------------------------------------------------------------
# Parameter construction (deterministic, PyTorch nn.Linear layout + init range)
# ----------------------------------------------------------------------------
def init_params(team_weights_size, hidden1=10, hidden2=20, out_dim=3):
    in_dim = 3 + team_weights_size
    ks = jax.random.split(jax.random.PRNGKey(0), 6)

    def linear(kw, kb, fan_in, fan_out):
        bound = 1.0 / jnp.sqrt(fan_in)
        w = jax.random.uniform(kw, (fan_out, fan_in), jnp.float32, -bound, bound)
        b = jax.random.uniform(kb, (fan_out,), jnp.float32, -bound, bound)
        return w, b

    w1, b1 = linear(ks[0], ks[1], in_dim, hidden1)
    w2, b2 = linear(ks[2], ks[3], hidden1, hidden2)
    w3, b3 = linear(ks[4], ks[5], hidden2, out_dim)
    return (w1, b1, w2, b2, w3, b3)


# Pure-JAX f32 reference mirroring the PyTorch forward (eval mode).
def _ref_forward(inp, teams, team_table, params):
    w1, b1, w2, b2, w3, b3 = params
    teams_weights = team_table[teams]                              # (B, T)
    x = jnp.concatenate([inp, teams_weights], axis=1)              # (B, 3+T)
    h1 = jnp.maximum(jnp.dot(x, w1.T, precision="highest") + b1, 0.0)
    h2 = jnp.maximum(jnp.dot(h1, w2.T, precision="highest") + b2, 0.0)
    return jnp.dot(h2, w3.T, precision="highest") + b3


if __name__ == "__main__":
    TEAM_W = 5                # team_weights_size
    NUM_TEAMS = 32
    BATCH = 256               # small demo batch (single full-array tile, grid=(1,))

    key = jax.random.PRNGKey(0)
    k_in, k_teams, k_table = jax.random.split(key, 3)

    inp = jax.random.normal(k_in, (BATCH, 3), jnp.float32)
    teams = jax.random.randint(k_teams, (BATCH,), 0, NUM_TEAMS, jnp.int32)
    # TODO(synk): get_teams_caracteristics is defined outside the original
    # module; a deterministic embedding table stands in for it here.
    team_table = jax.random.normal(k_table, (NUM_TEAMS, TEAM_W), jnp.float32)

    params = init_params(TEAM_W)

    out = first_half_nn_forward(inp, teams, team_table, params)
    jax.block_until_ready(out)
    ref = _ref_forward(inp, teams, team_table, params)
    assert out.shape == (BATCH, 3)
    assert jnp.allclose(out, ref, atol=2e-2, rtol=2e-2), (
        float(jnp.max(jnp.abs(out - ref))))

    # Also exercise the multi-step grid (>= 2 tiles) + padded-last-tile path.
    B2 = 768
    k2_in, k2_teams = jax.random.split(jax.random.PRNGKey(1))
    inp2 = jax.random.normal(k2_in, (B2, 3), jnp.float32)
    teams2 = jax.random.randint(k2_teams, (B2,), 0, NUM_TEAMS, jnp.int32)
    out2 = first_half_nn_forward(inp2, teams2, team_table, params)
    jax.block_until_ready(out2)
    ref2 = _ref_forward(inp2, teams2, team_table, params)
    assert out2.shape == (B2, 3)
    assert jnp.allclose(out2, ref2, atol=2e-2, rtol=2e-2), (
        float(jnp.max(jnp.abs(out2 - ref2))))

    print("KERNEL_OK")
</pallas_src>

<mosaic_0001>
module attributes {stable_mosaic.version = 11 : i64} {
  func.func @_first_half_nn_kernel(%arg0: i32, %arg1: memref<256x3xf32, #tpu.memory_space<vmem>>, %arg2: memref<1x256xi32, #tpu.memory_space<vmem>>, %arg3: memref<10x3xf32, #tpu.memory_space<vmem>>, %arg4: memref<10x32xf32, #tpu.memory_space<vmem>>, %arg5: memref<10x1xf32, #tpu.memory_space<vmem>>, %arg6: memref<20x10xf32, #tpu.memory_space<vmem>>, %arg7: memref<20x1xf32, #tpu.memory_space<vmem>>, %arg8: memref<3x20xf32, #tpu.memory_space<vmem>>, %arg9: memref<3x1xf32, #tpu.memory_space<vmem>>, %arg10: memref<3x256xf32, #tpu.memory_space<vmem>>) attributes {dimension_semantics = [#tpu.dimension_semantics<parallel>], iteration_bounds = array<i64: 1>, scalar_prefetch = 0 : i64, scratch_operands = 0 : i64, tpu.core_type = #tpu.core_type<tc>, window_params = [{transform_indices = @transform_0, window_bounds = array<i64: 256, 3>}, {transform_indices = @transform_1, window_bounds = array<i64: 1, 256>}, {pipeline_mode = #tpu.pipeline_mode<synchronous>, transform_indices = @transform_2, window_bounds = array<i64: 10, 3>}, {pipeline_mode = #tpu.pipeline_mode<synchronous>, transform_indices = @transform_3, window_bounds = array<i64: 10, 32>}, {pipeline_mode = #tpu.pipeline_mode<synchronous>, transform_indices = @transform_4, window_bounds = array<i64: 10, 1>}, {pipeline_mode = #tpu.pipeline_mode<synchronous>, transform_indices = @transform_5, window_bounds = array<i64: 20, 10>}, {pipeline_mode = #tpu.pipeline_mode<synchronous>, transform_indices = @transform_6, window_bounds = array<i64: 20, 1>}, {pipeline_mode = #tpu.pipeline_mode<synchronous>, transform_indices = @transform_7, window_bounds = array<i64: 3, 20>}, {pipeline_mode = #tpu.pipeline_mode<synchronous>, transform_indices = @transform_8, window_bounds = array<i64: 3, 1>}, {transform_indices = @transform_9, window_bounds = array<i64: 3, 256>}]} {
    %c0 = arith.constant 0 : index
    %c0_0 = arith.constant 0 : index
    %0 = vector.load %arg3[%c0, %c0_0] : memref<10x3xf32, #tpu.memory_space<vmem>>, vector<10x3xf32>
    %c0_1 = arith.constant 0 : index
    %c0_2 = arith.constant 0 : index
    %1 = vector.load %arg1[%c0_1, %c0_2] : memref<256x3xf32, #tpu.memory_space<vmem>>, vector<256x3xf32>
    %cst = arith.constant dense<0.000000e+00> : vector<10x256xf32>
    %2 = tpu.matmul %0, %1, %cst {dimension_numbers = #tpu.dot_dimension_numbers<[1], [1], [0], [0], [0, 0, 1, 0], [], []>} : vector<10x3xf32>, vector<256x3xf32>, vector<10x256xf32> -> vector<10x256xf32>
    %c0_3 = arith.constant 0 : index
    %c0_4 = arith.constant 0 : index
    %3 = vector.load %arg2[%c0_3, %c0_4] : memref<1x256xi32, #tpu.memory_space<vmem>>, vector<1x256xi32>
    %4 = tpu.iota {dimensions = array<i32: 0>} : vector<32x256xi32>
    %5 = vector.broadcast %3 : vector<1x256xi32> to vector<32x256xi32>
    %6 = arith.cmpi eq, %4, %5 : vector<32x256xi32>
    %7 = arith.extui %6 : vector<32x256xi1> to vector<32x256xi32>
    %8 = arith.sitofp %7 : vector<32x256xi32> to vector<32x256xf32>
    %c0_5 = arith.constant 0 : index
    %c0_6 = arith.constant 0 : index
    %9 = vector.load %arg4[%c0_5, %c0_6] : memref<10x32xf32, #tpu.memory_space<vmem>>, vector<10x32xf32>
    %cst_7 = arith.constant dense<0.000000e+00> : vector<10x256xf32>
    %10 = tpu.matmul %9, %8, %cst_7 {dimension_numbers = #tpu.dot_dimension_numbers<[1], [0], [0], [1], [0, 0, 1, 1], [], []>} : vector<10x32xf32>, vector<32x256xf32>, vector<10x256xf32> -> vector<10x256xf32>
    %11 = arith.addf %2, %10 : vector<10x256xf32>
    %c0_8 = arith.constant 0 : index
    %c0_9 = arith.constant 0 : index
    %12 = vector.load %arg5[%c0_8, %c0_9] : memref<10x1xf32, #tpu.memory_space<vmem>>, vector<10x1xf32>
    %13 = vector.broadcast %12 : vector<10x1xf32> to vector<10x256xf32>
    %14 = arith.addf %11, %13 : vector<10x256xf32>
    %cst_10 = arith.constant 0.000000e+00 : f32
    %15 = vector.broadcast %cst_10 : f32 to vector<10x256xf32>
    %16 = arith.maximumf %14, %15 : vector<10x256xf32>
    %c0_11 = arith.constant 0 : index
    %c0_12 = arith.constant 0 : index
    %17 = vector.load %arg6[%c0_11, %c0_12] : memref<20x10xf32, #tpu.memory_space<vmem>>, vector<20x10xf32>
    %cst_13 = arith.constant dense<0.000000e+00> : vector<20x256xf32>
    %18 = tpu.matmul %17, %16, %cst_13 {dimension_numbers = #tpu.dot_dimension_numbers<[1], [0], [0], [1], [0, 0, 1, 1], [], []>} : vector<20x10xf32>, vector<10x256xf32>, vector<20x256xf32> -> vector<20x256xf32>
    %c0_14 = arith.constant 0 : index
    %c0_15 = arith.constant 0 : index
    %19 = vector.load %arg7[%c0_14, %c0_15] : memref<20x1xf32, #tpu.memory_space<vmem>>, vector<20x1xf32>
    %20 = vector.broadcast %19 : vector<20x1xf32> to vector<20x256xf32>
    %21 = arith.addf %18, %20 : vector<20x256xf32>
    %cst_16 = arith.constant 0.000000e+00 : f32
    %22 = vector.broadcast %cst_16 : f32 to vector<20x256xf32>
    %23 = arith.maximumf %21, %22 : vector<20x256xf32>
    %c0_17 = arith.constant 0 : index
    %c0_18 = arith.constant 0 : index
    %24 = vector.load %arg8[%c0_17, %c0_18] : memref<3x20xf32, #tpu.memory_space<vmem>>, vector<3x20xf32>
    %cst_19 = arith.constant dense<0.000000e+00> : vector<3x256xf32>
    %25 = tpu.matmul %24, %23, %cst_19 {dimension_numbers = #tpu.dot_dimension_numbers<[1], [0], [0], [1], [0, 0, 1, 1], [], []>} : vector<3x20xf32>, vector<20x256xf32>, vector<3x256xf32> -> vector<3x256xf32>
    %c0_20 = arith.constant 0 : index
    %c0_21 = arith.constant 0 : index
    %26 = vector.load %arg9[%c0_20, %c0_21] : memref<3x1xf32, #tpu.memory_space<vmem>>, vector<3x1xf32>
    %27 = vector.broadcast %26 : vector<3x1xf32> to vector<3x256xf32>
    %28 = arith.addf %25, %27 : vector<3x256xf32>
    %c0_22 = arith.constant 0 : index
    %c0_23 = arith.constant 0 : index
    %29 = vector.load %arg10[%c0_22, %c0_23] : memref<3x256xf32, #tpu.memory_space<vmem>>, vector<3x256xf32>
    tpu.vector_store %arg10[%c0_22, %c0_23], %28 {strides = array<i32>} : memref<3x256xf32, #tpu.memory_space<vmem>>, vector<3x256xf32>,
    return
  }
  func.func @transform_0(%arg0: i32) -> (i32, i32) {
    %c0_i32 = arith.constant 0 : i32
    %c0_i32_0 = arith.constant 0 : i32
    return %arg0, %c0_i32 : i32, i32
  }
  func.func @transform_1(%arg0: i32) -> (i32, i32) {
    %c0_i32 = arith.constant 0 : i32
    %c0_i32_0 = arith.constant 0 : i32
    return %c0_i32, %arg0 : i32, i32
  }
  func.func @transform_2(%arg0: i32) -> (i32, i32) {
    %c0_i32 = arith.constant 0 : i32
    %c0_i32_0 = arith.constant 0 : i32
    %c0_i32_1 = arith.constant 0 : i32
    return %c0_i32, %c0_i32_0 : i32, i32
  }
  func.func @transform_3(%arg0: i32) -> (i32, i32) {
    %c0_i32 = arith.constant 0 : i32
    %c0_i32_0 = arith.constant 0 : i32
    %c0_i32_1 = arith.constant 0 : i32
    return %c0_i32, %c0_i32_0 : i32, i32
  }
  func.func @transform_4(%arg0: i32) -> (i32, i32) {
    %c0_i32 = arith.constant 0 : i32
    %c0_i32_0 = arith.constant 0 : i32
    %c0_i32_1 = arith.constant 0 : i32
    return %c0_i32, %c0_i32_0 : i32, i32
  }
  func.func @transform_5(%arg0: i32) -> (i32, i32) {
    %c0_i32 = arith.constant 0 : i32
    %c0_i32_0 = arith.constant 0 : i32
    %c0_i32_1 = arith.constant 0 : i32
    return %c0_i32, %c0_i32_0 : i32, i32
  }
  func.func @transform_6(%arg0: i32) -> (i32, i32) {
    %c0_i32 = arith.constant 0 : i32
    %c0_i32_0 = arith.constant 0 : i32
    %c0_i32_1 = arith.constant 0 : i32
    return %c0_i32, %c0_i32_0 : i32, i32
  }
  func.func @transform_7(%arg0: i32) -> (i32, i32) {
    %c0_i32 = arith.constant 0 : i32
    %c0_i32_0 = arith.constant 0 : i32
    %c0_i32_1 = arith.constant 0 : i32
    return %c0_i32, %c0_i32_0 : i32, i32
  }
  func.func @transform_8(%arg0: i32) -> (i32, i32) {
    %c0_i32 = arith.constant 0 : i32
    %c0_i32_0 = arith.constant 0 : i32
    %c0_i32_1 = arith.constant 0 : i32
    return %c0_i32, %c0_i32_0 : i32, i32
  }
  func.func @transform_9(%arg0: i32) -> (i32, i32) {
    %c0_i32 = arith.constant 0 : i32
    %c0_i32_0 = arith.constant 0 : i32
    return %c0_i32, %arg0 : i32, i32
  }
}

</mosaic_0001>

<bundles_post_ra>
// kernel: tpu_custom_call.1
= control target key start
LH: loop header
LB: loop body
LE: loop exit
PB: predicated region body
PF: predicated region fallthrough
CT: control target
= control target key end

     0   :  { %vm191_vm0 = vcmask 23552   ;;  %v68_v3 = vlaneseq  ;;  %v823_v11 = vmov 0.0   ;;  %v824_v12 = vmov 0   ;;  %s1083_s0 = inlined_call_operand.vmem [shape: f32[256,3], index: 0, kind: input, shape index: {}]   ;;  %s1084_s1 = inlined_call_operand.vmem [shape: s32[1,256], index: 1, kind: input, shape index: {}]   ;;  %s1085_s2 = inlined_call_operand.vmem [shape: f32[10,3], index: 2, kind: input, shape index: {}]   ;;  %s1086_s3 = inlined_call_operand.vmem [shape: f32[10,32], index: 3, kind: input, shape index: {}]   ;;  %s1087_s4 = inlined_call_operand.vmem [shape: f32[10,1], index: 4, kind: input, shape index: {}]   ;;  %s1088_s5 = inlined_call_operand.vmem [shape: f32[20,10], index: 5, kind: input, shape index: {}]   ;;  %s1089_s6 = inlined_call_operand.vmem [shape: f32[20,1], index: 6, kind: input, shape index: {}]   ;;  %s1090_s7 = inlined_call_operand.vmem [shape: f32[3,20], index: 7, kind: input, shape index: {}]   ;;  %s1091_s8 = inlined_call_operand.vmem [shape: f32[3,1], index: 8, kind: input, shape index: {}]   ;;  %s1092_s9 = inlined_call_operand.hbm [shape: f32[3,256], index: 9, kind: output, shape index: {}]  }
   0x1   :  { %v51_v0 = vld [vmem:[%s1083_s0 + $0x80] sm:$0xff]  ;;  %v52_v1 = vld [vmem:[%s1083_s0 + $0x88] sm:$0xff]  ;;  %vm889_vm1 = vmpackc.low %vm191_vm0, %vm191_vm0  ;;  %178 = vmatprep.mubr.f32.mxu1 %v823_v11  ;;  %797 = vset.pattern.permute.xlu0 %v824_v12  ;;  %v825_v34 = vmov 1.0|1.0  }
   0x2   :  { %v35_v2 = vld [vmem:[%s1083_s0] sm:$0xff]  ;;  %v730_v4 = vpack.c.bf16 %v52_v1, %v51_v0  ;;  %v36_v6 = vld [vmem:[%s1083_s0 + $0x8] sm:$0xff]  ;;  %v53_v7 = vld [vmem:[%s1083_s0 + $0x90] sm:$0xff]  ;;  %v69_v10 = vshrl.u32 %v68_v3, 7  ;;  %798 = vset.pattern.permute.xlu1 %v824_v12 }
   0x3   :  { %v733_v8 = vpack.c.bf16 %v36_v6, %v35_v2  ;;  %v54_v9 = vld [vmem:[%s1083_s0 + $0x98] sm:$0xff]  ;;  %v37_v14 = vld [vmem:[%s1083_s0 + $0x10] sm:$0xff]  ;;  %v55_v16 = vld [vmem:[%s1083_s0 + $0xa0] sm:$0xff] }
   0x4   :  { %732 = vmatprep.subr.msk.bf16.mxu0 %vm889_vm1, %v730_v4  ;;  %v736_v13 = vpack.c.bf16 %v54_v9, %v53_v7  ;;  %v38_v15 = vld [vmem:[%s1083_s0 + $0x18] sm:$0xff]  ;;  %v56_v17 = vld [vmem:[%s1083_s0 + $0xa8] sm:$0xff]  ;;  %v79_v18 = vsub.s32 1, %v69_v10  ;;  %v75_v19 = vsub.s32 0, %v69_v10  ;;  %v70_v21 = vadd.s32 8, %v69_v10  ;;  %v927_v28 = vld [vmem:[%s1085_s2] sm:$0xff] }
   0x5   :  { %735 = vmatpush3.bf16.xpose.msk.msra.mxu0 %vm889_vm1, %v733_v8  ;;  %v739_v20 = vpack.c.bf16 %v38_v15, %v37_v14  ;;  %v742_v22 = vpack.c.bf16 %v56_v17, %v55_v16  ;;  %v67_v23 = vld [vmem:[%s1084_s1] sm:$0x3]  ;;  %v71_v24 = vadd.s32 16, %v69_v10  ;;  %v72_v25 = vadd.s32 24, %v69_v10  ;;  %v40_v31 = vld [vmem:[%s1083_s0 + $0x28] sm:$0xff]  ;;  %v57_v32 = vld [vmem:[%s1083_s0 + $0xb0] sm:$0xff]  ;;  %718 = vmatprep.mubr.msk.f32.mxu0 %vm191_vm0, %v927_v28 }
   0x6   :  { %738 = vmatprep.subr.msk.bf16.mxu0 %vm889_vm1, %v736_v13  ;;  %v80_v26 = vrot.slane %v67_v23, %v79_v18  ;;  %v76_v27 = vrot.slane %v67_v23, %v75_v19  ;;  %v371_v29 = vld [vmem:[%s1087_s4] sm:$0xff]  ;;  %v58_v33 = vld [vmem:[%s1083_s0 + $0xb8] sm:$0xff]  ;;  %v372_v36 = vld [vmem:[%s1087_s4 + $0x8] sm:$0x3] }
   0x7   :  { %v39_v30 = vld [vmem:[%s1083_s0 + $0x20] sm:$0xff]  ;;  %375 = vperm.xlu0 %797, %v371_v29   ;;  %v748_v37 = vpack.c.bf16 %v58_v33, %v57_v32 }
   0x8   :  { %vm82_vm2 = vcmp.eq.s32.totalorder %v69_v10, %v80_v26  ;;  %vm84_vm3 = vcmp.eq.s32.totalorder %v70_v21, %v80_v26  ;;  %vm81_vm4 = vcmp.eq.s32.totalorder %v69_v10, %v76_v27  ;;  %vm83_vm5 = vcmp.eq.s32.totalorder %v70_v21, %v76_v27 }
   0x9   :  { %vm722_vm6 = vmpackc.low %vm84_vm3, %vm82_vm2  ;;  %vm86_vm7 = vcmp.eq.s32.totalorder %v71_v24, %v80_v26  ;;  %vm88_vm8 = vcmp.eq.s32.totalorder %v72_v25, %v80_v26  ;;  %vm85_vm9 = vcmp.eq.s32.totalorder %v71_v24, %v76_v27  ;;  %vm87_vm11 = vcmp.eq.s32.totalorder %v72_v25, %v76_v27 }
   0xa   :  { %723 = vmatprep.subr.msk.bf16.mxu1 %vm722_vm6, %v825_v34  ;;  %vm724_vm10 = vmpackc.low %vm83_vm5, %vm81_vm4  ;;  %v745_v35 = vpack.c.bf16 %v40_v31, %v39_v30 }
   0xb   :  { %725 = vmatpush1.bf16.msk.msra.mxu1 %vm724_vm10, %v825_v34  ;;  %vm726_vm12 = vmpackc.low %vm88_vm8, %vm86_vm7 }
   0xc   :  { %727 = vmatprep.subr.msk.bf16.mxu1 %vm726_vm12, %v825_v34  ;;  %vm728_vm13 = vmpackc.low %vm87_vm11, %vm85_vm9 }
   0xd   :  { %741 = vmatpush3.bf16.xpose.msk.msra.mxu0 %vm889_vm1, %v739_v20 }
   0xe   :  { %744 = vmatprep.subr.msk.bf16.mxu0 %vm889_vm1, %v742_v22 }
   0xf   :  { %14 = vsyncpa [#allocation3], 0  ;;  %729 = vmatpush1.bf16.msk.msra.mxu1 %vm728_vm13, %v825_v34  ;;  %v105_v38 = vld [vmem:[%s1086_s3] sm:$0xff]  ;;  %vm107_vm14 = vcmask 261120   ;;  %380 = vperm.xlu0 %797, %v372_v36   ;;  %v396_v39 = vld [vmem:[%s1089_s6 + $0x10] sm:$0xf] }
  0x10   :  { %v41_v40 = vld [vmem:[%s1083_s0 + $0x30] sm:$0xff]  ;;  %v42_v41 = vld [vmem:[%s1083_s0 + $0x38] sm:$0xff]  ;;  %v59_v42 = vld [vmem:[%s1083_s0 + $0xc0] sm:$0xff]  ;;  %vm422_vm15 = vcmask 1041408   ;;  %vm412_vm2 = vcmask 80896   ;;  %vm529_vm3 = vcmask 1043456  }
  0x11   :  { %v60_v43 = vld [vmem:[%s1083_s0 + $0xc8] sm:$0xff]  ;;  %v751_v45 = vpack.c.bf16 %v42_v41, %v41_v40  ;;  %v43_v47 = vld [vmem:[%s1083_s0 + $0x40] sm:$0xff]  ;;  %v61_v49 = vld [vmem:[%s1083_s0 + $0xd0] sm:$0xff]  ;;  %vm525_vm4 = vcmask 162816   ;;  %s827_s27 = smov [#allocation2]  }
  0x12   :  { %642 = vmatmul.mubr.msk.f32.vlgmr.msra.gmra.mrb[0].mxu1 %vm107_vm14, %v105_v38  ;;  %v106_v44 = vld [vmem:[%s1086_s3 + $0x8] sm:$0x3]  ;;  %v754_v46 = vpack.c.bf16 %v60_v43, %v59_v42  ;;  %v62_v50 = vld [vmem:[%s1083_s0 + $0xd8] sm:$0xff]  ;;  %v45_v53 = vld [vmem:[%s1083_s0 + $0x50] sm:$0xff]  ;;  %s618_s28 = sshll.u32 %s827_s27, 4  ;;  %s619_s28 = int_to_ptr.vmem [resolvable:$true] %s618_s28 }
  0x13   :  { %184 = vmatprep.mubr.f32.mxu1 %v823_v11  ;;  %409 = vperm.xlu0 %797, %v396_v39   ;;  %v44_v48 = vld [vmem:[%s1083_s0 + $0x48] sm:$0xff]  ;;  %v760_v52 = vpack.c.bf16 %v62_v50, %v61_v49  ;;  %v46_v54 = vld [vmem:[%s1083_s0 + $0x58] sm:$0xff]  ;;  %v63_v55 = vld [vmem:[%s1083_s0 + $0xe0] sm:$0xff]  ;;  %s799_s29 = scalar_lea.vmem %s619_s28, 128  ;;  %p804_p1 = scmp.lt.s32.totalorder %s619_s28, %s619_s28 }
  0x14   :  { %v757_v51 = vpack.c.bf16 %v44_v48, %v43_v47  ;;  %v64_v56 = vld [vmem:[%s1083_s0 + $0xe8] sm:$0xff]  ;;  %v763_v57 = vpack.c.bf16 %v46_v54, %v45_v53  ;;  %v47_v59 = vld [vmem:[%s1083_s0 + $0x60] sm:$0xff]  ;;  %v65_v61 = vld [vmem:[%s1083_s0 + $0xf0] sm:$0xff]  ;;  %p800_p0 = scmp.ne.s32.totalorder %s619_s28, %s799_s29  ;;  %p805_p2 = scmp.lt.s32.totalorder %s799_s29, %s799_s29 }
  0x15   :  { %747 = vmatpush3.bf16.xpose.msk.msra.mxu0 %vm889_vm1, %v745_v35  ;;  %v766_v58 = vpack.c.bf16 %v64_v56, %v63_v55  ;;  %v48_v60 = vld [vmem:[%s1083_s0 + $0x68] sm:$0xff]  ;;  %v66_v62 = vld [vmem:[%s1083_s0 + $0xf8] sm:$0xff]  ;;  %v49_v1 = vld [vmem:[%s1083_s0 + $0x70] sm:$0xff] }
  0x16   :  { %750 = vmatprep.subr.msk.bf16.mxu0 %vm889_vm1, %v748_v37  ;;  %643 = vmatmul.mubr.msk.f32.gmra.mrb[2].mxu1 %vm107_vm14, %v106_v44  ;;  %v769_v63 = vpack.c.bf16 %v48_v60, %v47_v59  ;;  %v772_v0 = vpack.c.bf16 %v66_v62, %v65_v61  ;;  %v50_v2 = vld [vmem:[%s1083_s0 + $0x78] sm:$0xff]  ;;  %v34_v4 = vld [vmem:[%s1085_s2 + $0x8] sm:$0x3]  ;;  %v394_v6 = vld [vmem:[%s1089_s6] sm:$0xff]  ;;  %p806_p3 = por %p805_p2, %p804_p1 }
  0x17   :  { %493 = vmatprep.mubr.f32.mxu1 %v823_v11  ;;  %v775_v3 = vpack.c.bf16 %v50_v2, %v49_v1  ;;  %399 = vperm.xlu1 %798, %v394_v6   ;;  %v395_v5 = vld [vmem:[%s1089_s6 + $0x8] sm:$0xff]  ;;  %v519_v7 = vld [vmem:[%s1091_s8] sm:$0x7]  ;;  %v393_v35 = vld [vmem:[%s1088_s5 + $0x10] sm:$0xf] }
  0x18   :  { %v391_v33 = vld [vmem:[%s1088_s5] sm:$0xff]  ;;  %v392_v34 = vld [vmem:[%s1088_s5 + $0x8] sm:$0xff]  ;;  %p807_p4 = pnand %p806_p3, %p800_p0 }
  0x1b   :  { %404 = vperm.xlu1 %798, %v395_v5  }
  0x1d   :  { %753 = vmatpush3.bf16.xpose.msk.msra.mxu0 %vm889_vm1, %v751_v45 }
  0x1e   :  { %756 = vmatprep.subr.msk.bf16.mxu0 %vm889_vm1, %v754_v46 }
  0x1f   :  { %522 = vperm.xlu1 %798, %v519_v7  }
  0x25   :  { %759 = vmatpush3.bf16.xpose.msk.msra.mxu0 %vm889_vm1, %v757_v51 }
  0x26   :  { %762 = vmatprep.subr.msk.bf16.mxu0 %vm889_vm1, %v760_v52 }
  0x2d   :  { %765 = vmatpush3.bf16.xpose.msk.msra.mxu0 %vm889_vm1, %v763_v57 }
  0x2e   :  { %768 = vmatprep.subr.msk.bf16.mxu0 %vm889_vm1, %v766_v58  ;;  %v518_v58 = vld [vmem:[%s1090_s7] sm:$0x7] }
  0x35   :  { %771 = vmatpush3.bf16.xpose.msk.msra.mxu0 %vm889_vm1, %v769_v63 }
  0x36   :  { %774 = vmatprep.subr.msk.bf16.mxu0 %vm889_vm1, %v772_v0 }
  0x3d   :  { %777 = vmatpush3.bf16.xpose.msk.msra.mxu0 %vm889_vm1, %v775_v3 }
  0x44   :  { %719 = vmatmul.mubr.msk.f32.vlgmr.msra.gmra.mrb[0].mxu0 %vm191_vm0, %v927_v28 }
  0x45   :  { %720 = vmatprep.mubr.msk.f32.mxu0 %vm191_vm0, %v34_v4 }
  0x48   :  { %721 = vmatmul.mubr.msk.f32.gmra.mrb[2].mxu0 %vm191_vm0, %v34_v4  ;;  %vm826_vm0 = vmmov 1  }
  0x49   :  { %vm779_vm1 = vmpackc.low %vm422_vm15, %vm826_vm0 }
  0x86   :  { %v376_v13 = vpop.permute.xlu0 %375 }
  0x8e   :  { %v381_v22 = vpop.permute.xlu0 %380 }
  0x92   :  { %v410_v51 = vpop.permute.xlu0 %409 }
  0x96   :  { %v400_v36 = vpop.permute.xlu1 %399 }
  0x9a   :  { %v405_v40 = vpop.permute.xlu1 %404 }
  0x9e   :  { %v523_v59 = vpop.permute.xlu1 %522 }
  0xe5   :  { %v180_v8 = vpop.f32.mrb[0].mxu1 }
  0xe6   :  { %v182_v9 = vpop.f32.mrb[1].mxu1 }
  0xe9   :  { %v186_v10 = vpop.f32.mrb[2].mxu1 }
  0xea   :  { %v188_v12 = vpop.f32.mrb[3].mxu1 }
 0x117   :  { %v360_v14 = vpop.f32.mrb[0].mxu0 }
 0x118   :  { %v361_v15 = vadd.f32 %v360_v14, %v180_v8  ;;  %v362_v16 = vpop.f32.mrb[1].mxu0 }
 0x119   :  { %v363_v17 = vadd.f32 %v362_v16, %v182_v9 }
 0x11a   :  { %v383_v19 = vadd.f32 %v376_v13, %v361_v15 }
 0x11b   :  { %v366_v18 = vpop.f32.mrb[2].mxu0  ;;  %v384_v23 = vadd.f32 %v376_v13, %v363_v17 }
 0x11c   :  { %v367_v20 = vadd.f32 %v366_v18, %v186_v10  ;;  %v368_v21 = vpop.f32.mrb[3].mxu0  ;;  %v387_v27 = vmax.f32 %v383_v19, 0.0 }
 0x11d   :  { %v369_v24 = vadd.f32 %v368_v21, %v188_v12  ;;  %v388_v29 = vmax.f32 %v384_v23, 0.0 }
 0x11e   :  { %v385_v25 = vadd.f32 %v381_v22, %v367_v20 }
 0x11f   :  { %v386_v26 = vadd.f32 %v381_v22, %v369_v24 }
 0x120   :  { %v389_v28 = vmax.f32 %v385_v25, 0.0 }
 0x121   :  { %v390_v30 = vmax.f32 %v386_v26, 0.0 }
 0x122   :  { %v781_v31 = vpack.c.bf16 %v389_v28, %v387_v27 }
 0x123   :  { %v778_v32 = vpack.c.bf16 %v390_v30, %v388_v29 }
 0x125   :  { %780 = vmatprep.subr.msk.bf16.mxu1 %vm779_vm1, %v778_v32 }
 0x126   :  { %783 = vmatpush1.bf16.msk.msra.mxu1 %vm779_vm1, %v781_v31 }
 0x129   :  { %680 = vmatmul.mubr.msk.f32.vlgmr.msra.gmra.mrb[4].mxu1 %vm412_vm2, %v391_v33 }
 0x12a   :  { %499 = vmatprep.mubr.f32.mxu1 %v823_v11 }
 0x12d   :  { %681 = vmatmul.mubr.msk.f32.gmra.mrb[6].mxu1 %vm412_vm2, %v392_v34 }
 0x12e   :  { %505 = vmatprep.mubr.f32.mxu1 %v823_v11 }
 0x131   :  { %682 = vmatmul.mubr.msk.f32.gmra.mrb[8].mxu1 %vm412_vm2, %v393_v35 }
 0x132   :  { %600 = vmatprep.mubr.f32.mxu1 %v823_v11 }
 0x1fc   :  { %v495_v37 = vpop.f32.mrb[4].mxu1 }
 0x1fd   :  { %v497_v38 = vpop.f32.mrb[5].mxu1  ;;  %v496_v39 = vadd.f32 %v495_v37, %v400_v36 }
 0x1fe   :  { %v498_v41 = vadd.f32 %v497_v38, %v400_v36 }
 0x1ff   :  { %v512_v46 = vmax.f32 %v496_v39, 0.0 }
 0x200   :  { %v501_v42 = vpop.f32.mrb[6].mxu1  ;;  %v513_v48 = vmax.f32 %v498_v41, 0.0 }
 0x201   :  { %v502_v43 = vadd.f32 %v501_v42, %v405_v40  ;;  %v503_v44 = vpop.f32.mrb[7].mxu1 }
 0x202   :  { %v504_v45 = vadd.f32 %v503_v44, %v405_v40 }
 0x203   :  { %v514_v47 = vmax.f32 %v502_v43, 0.0 }
 0x204   :  { %v515_v49 = vmax.f32 %v504_v45, 0.0  ;;  %v507_v50 = vpop.f32.mrb[8].mxu1 }
 0x205   :  { %v786_v52 = vpack.c.bf16 %v514_v47, %v512_v46  ;;  %v509_v53 = vpop.f32.mrb[9].mxu1  ;;  %v508_v55 = vadd.f32 %v507_v50, %v410_v51 }
 0x206   :  { %v784_v54 = vpack.c.bf16 %v515_v49, %v513_v48  ;;  %v510_v11 = vadd.f32 %v509_v53, %v410_v51 }
 0x207   :  { %v516_v57 = vmax.f32 %v508_v55, 0.0 }
 0x208   :  { %v517_v56 = vmax.f32 %v510_v11, 0.0  ;;  %785 = vmatprep.subr.bf16.mxu1 %v784_v54 }
 0x209   :  { %787 = vmatpush1.bf16.msra.mxu1 %v786_v52 }
 0x20a   :  { %683 = vmatprep.subr.msk.mxu1 %vm529_vm3, %v517_v56 }
 0x20d   :  { %684 = vmatpush1.msk.msra.mxu1 %vm529_vm3, %v516_v57 }
 0x20e   :  { %685 = vmatmul.mubr.msk.f32.vlgmr.msra.gmra.mrb[10].mxu1 %vm525_vm4, %v518_v58 }
 0x2e1   :  { %v602_v60 = vpop.f32.mrb[10].mxu1 }
 0x2e2   :  { %v603_v61 = vadd.f32 %v602_v60, %v523_v59  ;;  %v604_v62 = vpop.f32.mrb[11].mxu1 }
 0x2e3   :  { %v605_v63 = vadd.f32 %v604_v62, %v523_v59 }
 0x2e5   :  { %v609_v0 = vcombine.low %v603_v61, %v605_v63 }
 0x2e7   :  { %611 = vst [vmem:[#allocation2] sm:$0x77] %v609_v0 }
 0x2e8   :  { %810 = shalt.err (!%p807_p4)
}
 0x2e9   :  { %s811_s10 = scalar_lea.hbm %s1092_s9, 128 }
 0x2ea   :  { %p812_p5 = scmp.ne.s32.totalorder %s1092_s9, %s811_s10  ;;  %p815_p6 = scmp.lt.u32.totalorder %s811_s10, %s1092_s9 }
 0x2ec   :  { %p817_p7 = pnand %p815_p6, %p812_p5 }
 0x2ee   :  { %820 = shalt.err (!%p817_p7)
}
 0x2ef   :  { %621 = dma.vmem_to_hbm [thread:$0]  %s619_s28, 128, %s1092_s9, [#allocation3]  }
 0x2f0   :  { %821 = dma.done.wait [#allocation3], 128  }
 0x2f1   :  { %822 = vsyncadd [#allocation3], 4294967168 }
 0x2f2   :  { %625 = vsyncpa [#allocation3], 1 }

</bundles_post_ra>
